<compile_context>
chip_gen: v7x
topology: tpu7x:2x2x1
jax: 0.10.0
libtpu: 0.0.40
codegen_flags: <defaults>
</compile_context>

<pallas_src>
import jax
import jax.numpy as jnp
from jax.experimental import pallas as pl
from jax.experimental.pallas import tpu as pltpu

LANE = 128                  # TPU lane width; feature axes zero-padded to this
N_LAYERS = 4                # n_gnn_layers=4
HV, HC = 8, 9               # hidden_dim=(8, 9)
FV, FC = 6, 5               # raw variable / constraint node feature dims
NV, NC = 16, 8              # #variable nodes, #constraint nodes per graph
G = 2                       # graphs stacked (block-diagonally) per grid step
R = G * (NV + NC)           # sublane rows per grid step (var rows first, then con rows)

# Lane layout (fixed for the whole net):
#   variable-node hidden features : lanes [0, HV)         = [0, 8)
#   constraint-node hidden feats  : lanes [HV, HV+HC)     = [8, 17)
#   raw var feats (input)         : lanes [0, FV)
#   raw con feats (input)         : lanes [FV, FV+FC)


def sanity_gnn_kernel(x_ref, adj_ref, pool_ref, mask_ref,
                      wemb_ref, bemb_ref, wlyr_ref, blyr_ref,
                      wlin_ref, blin_ref, out_ref):
    mask = mask_ref[...]                                   # (R, 128) 0/1 lane mask

    # node embedding: one dot for both node types (disjoint input/output lanes)
    h = jnp.maximum(
        jnp.dot(x_ref[...], wemb_ref[...], preferred_element_type=jnp.float32)
        + bemb_ref[...], 0.0) * mask                       # (R, 128)

    adj = adj_ref[...]                                     # (R, R) = [[0, A^T], [A, 0]]

    # 4 rounds of bipartite message passing: 2 dots per round for ALL graphs
    for l in range(N_LAYERS):
        msg = jnp.dot(adj, h, preferred_element_type=jnp.float32)      # messages, disjoint lanes
        h = jnp.maximum(
            jnp.dot(h + msg, wlyr_ref[l], preferred_element_type=jnp.float32)
            + blyr_ref[l], 0.0) * mask

    # per-graph mean pooling + implicit concat([mean hv | mean hc]) in lanes 0..16
    g = jnp.dot(pool_ref[...], h, preferred_element_type=jnp.float32)  # (G, 128)

    # final Linear(17, 2)
    preds = jnp.dot(g, wlin_ref[...], preferred_element_type=jnp.float32) + blin_ref[...]

    # mu = lane 0, var = exp(lane 1); lanes >= 2 are exactly 0 already
    lane = jax.lax.broadcasted_iota(jnp.int32, preds.shape, 1)
    out_ref[...] = jnp.where(lane == 1, jnp.exp(preds), preds)


def init_params(key):
    ks = jax.random.split(key, 12)
    s = 0.3
    p = {}
    p["wve"] = s * jax.random.normal(ks[0], (FV, HV), jnp.float32)
    p["bve"] = s * jax.random.normal(ks[1], (HV,), jnp.float32)
    p["wce"] = s * jax.random.normal(ks[2], (FC, HC), jnp.float32)
    p["bce"] = s * jax.random.normal(ks[3], (HC,), jnp.float32)
    p["wvv"] = s * jax.random.normal(ks[4], (N_LAYERS, HV, HV), jnp.float32)
    p["wcv"] = s * jax.random.normal(ks[5], (N_LAYERS, HC, HV), jnp.float32)
    p["bv"] = s * jax.random.normal(ks[6], (N_LAYERS, HV), jnp.float32)
    p["wcc"] = s * jax.random.normal(ks[7], (N_LAYERS, HC, HC), jnp.float32)
    p["wvc"] = s * jax.random.normal(ks[8], (N_LAYERS, HV, HC), jnp.float32)
    p["bc"] = s * jax.random.normal(ks[9], (N_LAYERS, HC), jnp.float32)
    p["wlin"] = s * jax.random.normal(ks[10], (HV + HC, 2), jnp.float32)  # Linear(17, 2)
    p["blin"] = s * jax.random.normal(ks[11], (2,), jnp.float32)
    return p


def prepare_params(p):
    """Pack / pad raw params ONCE (device-resident, off the per-call path)."""
    f32 = jnp.float32

    # embedding: var raw feats (rows 0..5) -> lanes 0..7, con raw feats (rows 6..10) -> lanes 8..16
    w_emb = jnp.zeros((LANE, LANE), f32)
    w_emb = w_emb.at[:FV, :HV].set(p["wve"])
    w_emb = w_emb.at[FV:FV + FC, HV:HV + HC].set(p["wce"])
    b_emb = jnp.zeros((1, LANE), f32)
    b_emb = b_emb.at[0, :HV].set(p["bve"]).at[0, HV:HV + HC].set(p["bce"])

    # per-layer packed update weights: one K=128 matrix per layer
    #   rows 0..7   : wvv (-> var lanes 0..7)   and wvc (-> con lanes 8..16)
    #   rows 8..16  : wcv (-> var lanes 0..7)   and wcc (-> con lanes 8..16)
    w_lyr = jnp.zeros((N_LAYERS, LANE, LANE), f32)
    w_lyr = w_lyr.at[:, :HV, :HV].set(p["wvv"])
    w_lyr = w_lyr.at[:, HV:HV + HC, :HV].set(p["wcv"])
    w_lyr = w_lyr.at[:, HV:HV + HC, HV:HV + HC].set(p["wcc"])
    w_lyr = w_lyr.at[:, :HV, HV:HV + HC].set(p["wvc"])
    b_lyr = jnp.zeros((N_LAYERS, 1, LANE), f32)
    b_lyr = b_lyr.at[:, 0, :HV].set(p["bv"]).at[:, 0, HV:HV + HC].set(p["bc"])

    # final Linear(17, 2): rows 0..16 (var lanes then con lanes), output lanes 0..1
    w_lin = jnp.zeros((LANE, LANE), f32).at[:HV + HC, :2].set(p["wlin"])
    b_lin = jnp.zeros((1, LANE), f32).at[0, :2].set(p["blin"])

    # per-group mean pooling as one matmul (1/NV over var rows, 1/NC over con rows)
    pool = jnp.zeros((G, R), f32)
    for b in range(G):
        pool = pool.at[b, b * NV:(b + 1) * NV].set(1.0 / NV)
        pool = pool.at[b, G * NV + b * NC:G * NV + (b + 1) * NC].set(1.0 / NC)

    # lane mask: var rows keep lanes 0..7, con rows keep lanes 8..16 (kills cross-block garbage)
    mask = jnp.zeros((R, LANE), f32)
    mask = mask.at[:G * NV, :HV].set(1.0)
    mask = mask.at[G * NV:, HV:HV + HC].set(1.0)

    return jax.device_put(dict(w_emb=w_emb, b_emb=b_emb, w_lyr=w_lyr, b_lyr=b_lyr,
                               w_lin=w_lin, b_lin=b_lin, pool=pool, mask=mask))


@jax.jit
def sanity_gnn_forward(xv, xc, A, pp):
    """Pallas forward. xv: (B,NV,FV), xc: (B,NC,FC), A: (B,NC,NV) -> (B, 2) = [mu, var]."""
    B = xv.shape[0]
    assert B % G == 0, "batch must be a multiple of the group size G"
    NG = B // G

    # stack G graphs per grid step along sublanes; var rows first, con rows after
    xv_p = jnp.pad(xv.reshape(NG, G * NV, FV), ((0, 0), (0, 0), (0, LANE - FV)))
    xc_p = jnp.pad(xc.reshape(NG, G * NC, FC), ((0, 0), (0, 0), (FV, LANE - FV - FC)))
    x = jnp.concatenate([xv_p, xc_p], axis=1)                      # (NG, R, 128)

    # bipartite block adjacency per group: [[0, A^T],[A, 0]], A block-diag over the G graphs
    a_grp = A.reshape(NG, G, NC, NV)
    eye = jnp.eye(G, dtype=A.dtype)
    a_bd = jnp.einsum("gh,ngij->ngihj", eye, a_grp).reshape(NG, G * NC, G * NV)
    at_bd = jnp.swapaxes(a_bd, 1, 2)
    adj = jnp.concatenate(
        [jnp.concatenate([jnp.zeros((NG, G * NV, G * NV), A.dtype), at_bd], axis=2),
         jnp.concatenate([a_bd, jnp.zeros((NG, G * NC, G * NC), A.dtype)], axis=2)],
        axis=1)                                                    # (NG, R, R)

    out = pl.pallas_call(
        sanity_gnn_kernel,
        out_shape=jax.ShapeDtypeStruct((NG, G, LANE), jnp.float32),
        grid=(NG,),
        in_specs=[
            pl.BlockSpec((None, R, LANE), lambda g: (g, 0, 0)),          # x      (per step)
            pl.BlockSpec((None, R, R), lambda g: (g, 0, 0)),             # adj    (per step)
            pl.BlockSpec((G, R), lambda g: (0, 0)),                      # pool   (resident)
            pl.BlockSpec((R, LANE), lambda g: (0, 0)),                   # mask   (resident)
            pl.BlockSpec((LANE, LANE), lambda g: (0, 0)),                # w_emb  (resident)
            pl.BlockSpec((1, LANE), lambda g: (0, 0)),                   # b_emb  (resident)
            pl.BlockSpec((N_LAYERS, LANE, LANE), lambda g: (0, 0, 0)),   # w_lyr  (resident)
            pl.BlockSpec((N_LAYERS, 1, LANE), lambda g: (0, 0, 0)),      # b_lyr  (resident)
            pl.BlockSpec((LANE, LANE), lambda g: (0, 0)),                # w_lin  (resident)
            pl.BlockSpec((1, LANE), lambda g: (0, 0)),                   # b_lin  (resident)
        ],
        out_specs=pl.BlockSpec((None, G, LANE), lambda g: (g, 0, 0)),
        compiler_params=pltpu.CompilerParams(dimension_semantics=("parallel",)),
    )(x, adj, pp["pool"], pp["mask"], pp["w_emb"], pp["b_emb"],
      pp["w_lyr"], pp["b_lyr"], pp["w_lin"], pp["b_lin"])

    return out.reshape(B, LANE)[:, :2]


def sanity_gnn_reference(xv, xc, A, p):
    """Pure-JAX reference (unpadded, unfused)."""
    relu = lambda t: jnp.maximum(t, 0.0)
    hv = relu(jnp.einsum("bnf,fh->bnh", xv, p["wve"]) + p["bve"])
    hc = relu(jnp.einsum("bnf,fh->bnh", xc, p["wce"]) + p["bce"])
    for l in range(N_LAYERS):
        m_c = jnp.einsum("bcv,bvh->bch", A, hv)
        m_v = jnp.einsum("bcv,bch->bvh", A, hc)
        hc_new = relu(hc @ p["wcc"][l] + m_c @ p["wvc"][l] + p["bc"][l])
        hv_new = relu(hv @ p["wvv"][l] + m_v @ p["wcv"][l] + p["bv"][l])
        hv, hc = hv_new, hc_new
    g = jnp.concatenate([hv.mean(axis=1), hc.mean(axis=1)], axis=-1)   # (B, 17)
    preds = g @ p["wlin"] + p["blin"]
    mu = preds[:, 0:1]
    var = jnp.exp(preds[:, 1:2])
    return jnp.concatenate([mu, var], axis=1)


if __name__ == "__main__":
    B = 4   # graphs; G=2 per grid step -> grid of 2 (exercises resident weights + parallel axis)

    key = jax.random.PRNGKey(0)
    kx, kp = jax.random.split(key)
    kxv, kxc, ka = jax.random.split(kx, 3)

    xv = jax.random.normal(kxv, (B, NV, FV), jnp.float32)       # variable-node features
    xc = jax.random.normal(kxc, (B, NC, FC), jnp.float32)       # constraint-node features
    A = jax.random.normal(ka, (B, NC, NV), jnp.float32) * 0.2   # coefficient matrices

    params = init_params(kp)
    padded_params = prepare_params(params)   # one-time packing, off the hot path

    out = jax.block_until_ready(sanity_gnn_forward(xv, xc, A, padded_params))
    ref = jax.block_until_ready(sanity_gnn_reference(xv, xc, A, params))

    assert out.shape == (B, 2), out.shape
    assert jnp.allclose(out, ref, rtol=1e-4, atol=1e-5), (out, ref)
    assert bool(jnp.all(out[:, 1] > 0)), "variance must be positive (exp)"
    print("KERNEL_OK")
</pallas_src>

<mosaic_0001>
module attributes {stable_mosaic.version = 11 : i64} {
  func.func @sanity_gnn_kernel(%arg0: i32, %arg1: memref<1x48x128xf32, #tpu.memory_space<vmem>>, %arg2: memref<1x48x48xf32, #tpu.memory_space<vmem>>, %arg3: memref<2x48xf32, #tpu.memory_space<vmem>>, %arg4: memref<48x128xf32, #tpu.memory_space<vmem>>, %arg5: memref<128x128xf32, #tpu.memory_space<vmem>>, %arg6: memref<1x128xf32, #tpu.memory_space<vmem>>, %arg7: memref<4x128x128xf32, #tpu.memory_space<vmem>>, %arg8: memref<4x1x128xf32, #tpu.memory_space<vmem>>, %arg9: memref<128x128xf32, #tpu.memory_space<vmem>>, %arg10: memref<1x128xf32, #tpu.memory_space<vmem>>, %arg11: memref<1x2x128xf32, #tpu.memory_space<vmem>>) attributes {dimension_semantics = [#tpu.dimension_semantics<parallel>], iteration_bounds = array<i64: 2>, scalar_prefetch = 0 : i64, scratch_operands = 0 : i64, tpu.core_type = #tpu.core_type<tc>, window_params = [{transform_indices = @transform_0, window_bounds = array<i64: 1, 48, 128>}, {transform_indices = @transform_1, window_bounds = array<i64: 1, 48, 48>}, {pipeline_mode = #tpu.pipeline_mode<synchronous>, transform_indices = @transform_2, window_bounds = array<i64: 2, 48>}, {pipeline_mode = #tpu.pipeline_mode<synchronous>, transform_indices = @transform_3, window_bounds = array<i64: 48, 128>}, {pipeline_mode = #tpu.pipeline_mode<synchronous>, transform_indices = @transform_4, window_bounds = array<i64: 128, 128>}, {pipeline_mode = #tpu.pipeline_mode<synchronous>, transform_indices = @transform_5, window_bounds = array<i64: 1, 128>}, {pipeline_mode = #tpu.pipeline_mode<synchronous>, transform_indices = @transform_6, window_bounds = array<i64: 4, 128, 128>}, {pipeline_mode = #tpu.pipeline_mode<synchronous>, transform_indices = @transform_7, window_bounds = array<i64: 4, 1, 128>}, {pipeline_mode = #tpu.pipeline_mode<synchronous>, transform_indices = @transform_8, window_bounds = array<i64: 128, 128>}, {pipeline_mode = #tpu.pipeline_mode<synchronous>, transform_indices = @transform_9, window_bounds = array<i64: 1, 128>}, {transform_indices = @transform_10, window_bounds = array<i64: 1, 2, 128>}]} {
    %c0 = arith.constant 0 : index
    %c0_0 = arith.constant 0 : index
    %0 = vector.load %arg4[%c0, %c0_0] : memref<48x128xf32, #tpu.memory_space<vmem>>, vector<48x128xf32>
    %c0_1 = arith.constant 0 : index
    %c0_2 = arith.constant 0 : index
    %c0_3 = arith.constant 0 : index
    %1 = vector.load %arg1[%c0_1, %c0_2, %c0_3] : memref<1x48x128xf32, #tpu.memory_space<vmem>>, vector<1x48x128xf32>
    %2 = vector.shape_cast %1 : vector<1x48x128xf32> to vector<48x128xf32>
    %c0_4 = arith.constant 0 : index
    %c0_5 = arith.constant 0 : index
    %3 = vector.load %arg5[%c0_4, %c0_5] : memref<128x128xf32, #tpu.memory_space<vmem>>, vector<128x128xf32>
    %cst = arith.constant dense<0.000000e+00> : vector<48x128xf32>
    %4 = tpu.matmul %2, %3, %cst {dimension_numbers = #tpu.dot_dimension_numbers<[1], [0], [0], [1], [0, 0, 1, 1], [], []>} : vector<48x128xf32>, vector<128x128xf32>, vector<48x128xf32> -> vector<48x128xf32>
    %c0_6 = arith.constant 0 : index
    %c0_7 = arith.constant 0 : index
    %5 = vector.load %arg6[%c0_6, %c0_7] : memref<1x128xf32, #tpu.memory_space<vmem>>, vector<1x128xf32>
    %6 = vector.broadcast %5 : vector<1x128xf32> to vector<48x128xf32>
    %7 = arith.addf %4, %6 : vector<48x128xf32>
    %cst_8 = arith.constant 0.000000e+00 : f32
    %8 = vector.broadcast %cst_8 : f32 to vector<48x128xf32>
    %9 = arith.maximumf %7, %8 : vector<48x128xf32>
    %10 = arith.mulf %9, %0 : vector<48x128xf32>
    %c0_9 = arith.constant 0 : index
    %c0_10 = arith.constant 0 : index
    %c0_11 = arith.constant 0 : index
    %11 = vector.load %arg2[%c0_9, %c0_10, %c0_11] : memref<1x48x48xf32, #tpu.memory_space<vmem>>, vector<1x48x48xf32>
    %12 = vector.shape_cast %11 : vector<1x48x48xf32> to vector<48x48xf32>
    %cst_12 = arith.constant dense<0.000000e+00> : vector<48x128xf32>
    %13 = tpu.matmul %12, %10, %cst_12 {dimension_numbers = #tpu.dot_dimension_numbers<[1], [0], [0], [1], [0, 0, 1, 1], [], []>} : vector<48x48xf32>, vector<48x128xf32>, vector<48x128xf32> -> vector<48x128xf32>
    %14 = arith.addf %10, %13 : vector<48x128xf32>
    %c0_13 = arith.constant 0 : index
    %c0_14 = arith.constant 0 : index
    %c0_15 = arith.constant 0 : index
    %15 = vector.load %arg7[%c0_13, %c0_14, %c0_15] : memref<4x128x128xf32, #tpu.memory_space<vmem>>, vector<1x128x128xf32>
    %16 = vector.shape_cast %15 : vector<1x128x128xf32> to vector<128x128xf32>
    %cst_16 = arith.constant dense<0.000000e+00> : vector<48x128xf32>
    %17 = tpu.matmul %14, %16, %cst_16 {dimension_numbers = #tpu.dot_dimension_numbers<[1], [0], [0], [1], [0, 0, 1, 1], [], []>} : vector<48x128xf32>, vector<128x128xf32>, vector<48x128xf32> -> vector<48x128xf32>
    %c0_17 = arith.constant 0 : index
    %c0_18 = arith.constant 0 : index
    %c0_19 = arith.constant 0 : index
    %18 = vector.load %arg8[%c0_17, %c0_18, %c0_19] : memref<4x1x128xf32, #tpu.memory_space<vmem>>, vector<1x1x128xf32>
    %19 = vector.shape_cast %18 : vector<1x1x128xf32> to vector<1x128xf32>
    %20 = vector.broadcast %19 : vector<1x128xf32> to vector<48x128xf32>
    %21 = arith.addf %17, %20 : vector<48x128xf32>
    %cst_20 = arith.constant 0.000000e+00 : f32
    %22 = vector.broadcast %cst_20 : f32 to vector<48x128xf32>
    %23 = arith.maximumf %21, %22 : vector<48x128xf32>
    %24 = arith.mulf %23, %0 : vector<48x128xf32>
    %cst_21 = arith.constant dense<0.000000e+00> : vector<48x128xf32>
    %25 = tpu.matmul %12, %24, %cst_21 {dimension_numbers = #tpu.dot_dimension_numbers<[1], [0], [0], [1], [0, 0, 1, 1], [], []>} : vector<48x48xf32>, vector<48x128xf32>, vector<48x128xf32> -> vector<48x128xf32>
    %26 = arith.addf %24, %25 : vector<48x128xf32>
    %c1 = arith.constant 1 : index
    %c0_22 = arith.constant 0 : index
    %c0_23 = arith.constant 0 : index
    %27 = vector.load %arg7[%c1, %c0_22, %c0_23] : memref<4x128x128xf32, #tpu.memory_space<vmem>>, vector<1x128x128xf32>
    %28 = vector.shape_cast %27 : vector<1x128x128xf32> to vector<128x128xf32>
    %cst_24 = arith.constant dense<0.000000e+00> : vector<48x128xf32>
    %29 = tpu.matmul %26, %28, %cst_24 {dimension_numbers = #tpu.dot_dimension_numbers<[1], [0], [0], [1], [0, 0, 1, 1], [], []>} : vector<48x128xf32>, vector<128x128xf32>, vector<48x128xf32> -> vector<48x128xf32>
    %c1_25 = arith.constant 1 : index
    %c0_26 = arith.constant 0 : index
    %c0_27 = arith.constant 0 : index
    %30 = vector.load %arg8[%c1_25, %c0_26, %c0_27] : memref<4x1x128xf32, #tpu.memory_space<vmem>>, vector<1x1x128xf32>
    %31 = vector.shape_cast %30 : vector<1x1x128xf32> to vector<1x128xf32>
    %32 = vector.broadcast %31 : vector<1x128xf32> to vector<48x128xf32>
    %33 = arith.addf %29, %32 : vector<48x128xf32>
    %cst_28 = arith.constant 0.000000e+00 : f32
    %34 = vector.broadcast %cst_28 : f32 to vector<48x128xf32>
    %35 = arith.maximumf %33, %34 : vector<48x128xf32>
    %36 = arith.mulf %35, %0 : vector<48x128xf32>
    %cst_29 = arith.constant dense<0.000000e+00> : vector<48x128xf32>
    %37 = tpu.matmul %12, %36, %cst_29 {dimension_numbers = #tpu.dot_dimension_numbers<[1], [0], [0], [1], [0, 0, 1, 1], [], []>} : vector<48x48xf32>, vector<48x128xf32>, vector<48x128xf32> -> vector<48x128xf32>
    %38 = arith.addf %36, %37 : vector<48x128xf32>
    %c2 = arith.constant 2 : index
    %c0_30 = arith.constant 0 : index
    %c0_31 = arith.constant 0 : index
    %39 = vector.load %arg7[%c2, %c0_30, %c0_31] : memref<4x128x128xf32, #tpu.memory_space<vmem>>, vector<1x128x128xf32>
    %40 = vector.shape_cast %39 : vector<1x128x128xf32> to vector<128x128xf32>
    %cst_32 = arith.constant dense<0.000000e+00> : vector<48x128xf32>
    %41 = tpu.matmul %38, %40, %cst_32 {dimension_numbers = #tpu.dot_dimension_numbers<[1], [0], [0], [1], [0, 0, 1, 1], [], []>} : vector<48x128xf32>, vector<128x128xf32>, vector<48x128xf32> -> vector<48x128xf32>
    %c2_33 = arith.constant 2 : index
    %c0_34 = arith.constant 0 : index
    %c0_35 = arith.constant 0 : index
    %42 = vector.load %arg8[%c2_33, %c0_34, %c0_35] : memref<4x1x128xf32, #tpu.memory_space<vmem>>, vector<1x1x128xf32>
    %43 = vector.shape_cast %42 : vector<1x1x128xf32> to vector<1x128xf32>
    %44 = vector.broadcast %43 : vector<1x128xf32> to vector<48x128xf32>
    %45 = arith.addf %41, %44 : vector<48x128xf32>
    %cst_36 = arith.constant 0.000000e+00 : f32
    %46 = vector.broadcast %cst_36 : f32 to vector<48x128xf32>
    %47 = arith.maximumf %45, %46 : vector<48x128xf32>
    %48 = arith.mulf %47, %0 : vector<48x128xf32>
    %cst_37 = arith.constant dense<0.000000e+00> : vector<48x128xf32>
    %49 = tpu.matmul %12, %48, %cst_37 {dimension_numbers = #tpu.dot_dimension_numbers<[1], [0], [0], [1], [0, 0, 1, 1], [], []>} : vector<48x48xf32>, vector<48x128xf32>, vector<48x128xf32> -> vector<48x128xf32>
    %50 = arith.addf %48, %49 : vector<48x128xf32>
    %c3 = arith.constant 3 : index
    %c0_38 = arith.constant 0 : index
    %c0_39 = arith.constant 0 : index
    %51 = vector.load %arg7[%c3, %c0_38, %c0_39] : memref<4x128x128xf32, #tpu.memory_space<vmem>>, vector<1x128x128xf32>
    %52 = vector.shape_cast %51 : vector<1x128x128xf32> to vector<128x128xf32>
    %cst_40 = arith.constant dense<0.000000e+00> : vector<48x128xf32>
    %53 = tpu.matmul %50, %52, %cst_40 {dimension_numbers = #tpu.dot_dimension_numbers<[1], [0], [0], [1], [0, 0, 1, 1], [], []>} : vector<48x128xf32>, vector<128x128xf32>, vector<48x128xf32> -> vector<48x128xf32>
    %c3_41 = arith.constant 3 : index
    %c0_42 = arith.constant 0 : index
    %c0_43 = arith.constant 0 : index
    %54 = vector.load %arg8[%c3_41, %c0_42, %c0_43] : memref<4x1x128xf32, #tpu.memory_space<vmem>>, vector<1x1x128xf32>
    %55 = vector.shape_cast %54 : vector<1x1x128xf32> to vector<1x128xf32>
    %56 = vector.broadcast %55 : vector<1x128xf32> to vector<48x128xf32>
    %57 = arith.addf %53, %56 : vector<48x128xf32>
    %cst_44 = arith.constant 0.000000e+00 : f32
    %58 = vector.broadcast %cst_44 : f32 to vector<48x128xf32>
    %59 = arith.maximumf %57, %58 : vector<48x128xf32>
    %60 = arith.mulf %59, %0 : vector<48x128xf32>
    %c0_45 = arith.constant 0 : index
    %c0_46 = arith.constant 0 : index
    %61 = vector.load %arg3[%c0_45, %c0_46] : memref<2x48xf32, #tpu.memory_space<vmem>>, vector<2x48xf32>
    %cst_47 = arith.constant dense<0.000000e+00> : vector<2x128xf32>
    %62 = tpu.matmul %61, %60, %cst_47 {dimension_numbers = #tpu.dot_dimension_numbers<[1], [0], [0], [1], [0, 0, 1, 1], [], []>} : vector<2x48xf32>, vector<48x128xf32>, vector<2x128xf32> -> vector<2x128xf32>
    %c0_48 = arith.constant 0 : index
    %c0_49 = arith.constant 0 : index
    %63 = vector.load %arg9[%c0_48, %c0_49] : memref<128x128xf32, #tpu.memory_space<vmem>>, vector<128x128xf32>
    %cst_50 = arith.constant dense<0.000000e+00> : vector<2x128xf32>
    %64 = tpu.matmul %62, %63, %cst_50 {dimension_numbers = #tpu.dot_dimension_numbers<[1], [0], [0], [1], [0, 0, 1, 1], [], []>} : vector<2x128xf32>, vector<128x128xf32>, vector<2x128xf32> -> vector<2x128xf32>
    %c0_51 = arith.constant 0 : index
    %c0_52 = arith.constant 0 : index
    %65 = vector.load %arg10[%c0_51, %c0_52] : memref<1x128xf32, #tpu.memory_space<vmem>>, vector<1x128xf32>
    %66 = vector.broadcast %65 : vector<1x128xf32> to vector<2x128xf32>
    %67 = arith.addf %64, %66 : vector<2x128xf32>
    %68 = tpu.iota {dimensions = array<i32: 1>} : vector<2x128xi32>
    %c1_i32 = arith.constant 1 : i32
    %69 = vector.broadcast %c1_i32 : i32 to vector<2x128xi32>
    %70 = arith.cmpi eq, %68, %69 : vector<2x128xi32>
    %71 = math.exp %67 : vector<2x128xf32>
    %72 = arith.select %70, %71, %67 : vector<2x128xi1>, vector<2x128xf32>
    %c0_53 = arith.constant 0 : index
    %c0_54 = arith.constant 0 : index
    %c0_55 = arith.constant 0 : index
    %73 = vector.load %arg11[%c0_53, %c0_54, %c0_55] : memref<1x2x128xf32, #tpu.memory_space<vmem>>, vector<1x2x128xf32>
    %74 = vector.shape_cast %73 : vector<1x2x128xf32> to vector<2x128xf32>
    %75 = vector.shape_cast %72 : vector<2x128xf32> to vector<1x2x128xf32>
    tpu.vector_store %arg11[%c0_53, %c0_54, %c0_55], %75 {strides = array<i32>} : memref<1x2x128xf32, #tpu.memory_space<vmem>>, vector<1x2x128xf32>,
    return
  }
  func.func @transform_0(%arg0: i32) -> (i32, i32, i32) {
    %c0_i32 = arith.constant 0 : i32
    %c0_i32_0 = arith.constant 0 : i32
    %c0_i32_1 = arith.constant 0 : i32
    return %arg0, %c0_i32, %c0_i32_0 : i32, i32, i32
  }
  func.func @transform_1(%arg0: i32) -> (i32, i32, i32) {
    %c0_i32 = arith.constant 0 : i32
    %c0_i32_0 = arith.constant 0 : i32
    %c0_i32_1 = arith.constant 0 : i32
    return %arg0, %c0_i32, %c0_i32_0 : i32, i32, i32
  }
  func.func @transform_2(%arg0: i32) -> (i32, i32) {
    %c0_i32 = arith.constant 0 : i32
    %c0_i32_0 = arith.constant 0 : i32
    %c0_i32_1 = arith.constant 0 : i32
    return %c0_i32, %c0_i32_0 : i32, i32
  }
  func.func @transform_3(%arg0: i32) -> (i32, i32) {
    %c0_i32 = arith.constant 0 : i32
    %c0_i32_0 = arith.constant 0 : i32
    %c0_i32_1 = arith.constant 0 : i32
    return %c0_i32, %c0_i32_0 : i32, i32
  }
  func.func @transform_4(%arg0: i32) -> (i32, i32) {
    %c0_i32 = arith.constant 0 : i32
    %c0_i32_0 = arith.constant 0 : i32
    %c0_i32_1 = arith.constant 0 : i32
    return %c0_i32, %c0_i32_0 : i32, i32
  }
  func.func @transform_5(%arg0: i32) -> (i32, i32) {
    %c0_i32 = arith.constant 0 : i32
    %c0_i32_0 = arith.constant 0 : i32
    %c0_i32_1 = arith.constant 0 : i32
    return %c0_i32, %c0_i32_0 : i32, i32
  }
  func.func @transform_6(%arg0: i32) -> (i32, i32, i32) {
    %c0_i32 = arith.constant 0 : i32
    %c0_i32_0 = arith.constant 0 : i32
    %c0_i32_1 = arith.constant 0 : i32
    %c0_i32_2 = arith.constant 0 : i32
    return %c0_i32, %c0_i32_0, %c0_i32_1 : i32, i32, i32
  }
  func.func @transform_7(%arg0: i32) -> (i32, i32, i32) {
    %c0_i32 = arith.constant 0 : i32
    %c0_i32_0 = arith.constant 0 : i32
    %c0_i32_1 = arith.constant 0 : i32
    %c0_i32_2 = arith.constant 0 : i32
    return %c0_i32, %c0_i32_0, %c0_i32_1 : i32, i32, i32
  }
  func.func @transform_8(%arg0: i32) -> (i32, i32) {
    %c0_i32 = arith.constant 0 : i32
    %c0_i32_0 = arith.constant 0 : i32
    %c0_i32_1 = arith.constant 0 : i32
    return %c0_i32, %c0_i32_0 : i32, i32
  }
  func.func @transform_9(%arg0: i32) -> (i32, i32) {
    %c0_i32 = arith.constant 0 : i32
    %c0_i32_0 = arith.constant 0 : i32
    %c0_i32_1 = arith.constant 0 : i32
    return %c0_i32, %c0_i32_0 : i32, i32
  }
  func.func @transform_10(%arg0: i32) -> (i32, i32, i32) {
    %c0_i32 = arith.constant 0 : i32
    %c0_i32_0 = arith.constant 0 : i32
    %c0_i32_1 = arith.constant 0 : i32
    return %arg0, %c0_i32, %c0_i32_0 : i32, i32, i32
  }
}

</mosaic_0001>

<bundles_post_ra>
// kernel: sanity_gnn_forward.1
= control target key start
LH: loop header
LB: loop body
LE: loop exit
PB: predicated region body
PF: predicated region fallthrough
CT: control target
= control target key end

     0   :  { %s2648_s13 = smov 0   ;;  %s3231_s0 = inlined_call_operand.vmem [shape: f32[2,48,128], index: 0, kind: input, shape index: {}]   ;;  %s3232_s1 = inlined_call_operand.vmem [shape: f32[2,48,48], index: 1, kind: input, shape index: {}]   ;;  %s3233_s2 = inlined_call_operand.vmem [shape: f32[2,48], index: 2, kind: input, shape index: {}]   ;;  %s3234_s3 = inlined_call_operand.vmem [shape: f32[48,128], index: 3, kind: input, shape index: {}]   ;;  %s3235_s4 = inlined_call_operand.vmem [shape: f32[128,128], index: 4, kind: input, shape index: {}]   ;;  %s3236_s5 = inlined_call_operand.vmem [shape: f32[1,128], index: 5, kind: input, shape index: {}]   ;;  %s3237_s6 = inlined_call_operand.vmem [shape: f32[4,128,128], index: 6, kind: input, shape index: {}]   ;;  %s3238_s7 = inlined_call_operand.vmem [shape: f32[4,1,128], index: 7, kind: input, shape index: {}]   ;;  %s3239_s8 = inlined_call_operand.vmem [shape: f32[128,128], index: 8, kind: input, shape index: {}]   ;;  %s3240_s9 = inlined_call_operand.vmem [shape: f32[1,128], index: 9, kind: input, shape index: {}]   ;;  %s3241_s10 = inlined_call_operand.vmem [shape: f32[2,2,128], index: 10, kind: output, shape index: {}]  }
   0x1 LB: > { %s1714_s14 = sadd.s32 4294967295, %s2588_s13   ;;  %p1718_p0 = scmp.ge.s32.totalorder %s2588_s13, 1  ;;  %s2588_s13 = sphi %s2648_s13, %s20_s13  }
   0x2   : > { %p322_p1 = scmp.lt.s32.totalorder %s2588_s13, 3 }
   0x4   : > { %p323_p2 = pnand %p1718_p0, %p322_p1 }
   0x5   : > { %v390_v0 = vld [vmem:[%s3235_s4] sm:$0xff] (!%p323_p2)  ;;  %v391_v1 = vld [vmem:[%s3235_s4 + $0x8] sm:$0xff] (!%p323_p2)  ;;  %v392_v2 = vld [vmem:[%s3235_s4 + $0x10] sm:$0xff] (!%p323_p2)  ;;  %p364_p3 = scmp.lt.s32.totalorder (!%p323_p2), %s1714_s14, 1  ;;  %vm526_vm0 = vcmask (!%p323_p2), 392192   ;;  %vm2591_vm1 = vmmov (!%p323_p2), 0  }
   0x6   : > { %326 = sbr.rel (%p323_p2) target bundleno = 2509 (0x9cd), region = 60  ;;  %v2327_v3 = vpack.c.bf16 (!%p323_p2), %v391_v1, %v390_v0  ;;  %v393_v4 = vld [vmem:[%s3235_s4 + $0x18] sm:$0xff] (!%p323_p2)  ;;  %v394_v6 = vld [vmem:[%s3235_s4 + $0x20] sm:$0xff] (!%p323_p2)  ;;  %v395_v7 = vld [vmem:[%s3235_s4 + $0x28] sm:$0xff] (!%p323_p2) }
   0x7   : > { %v2331_v5 = vpack.c.bf16 (!%p323_p2), %v393_v4, %v392_v2  ;;  %v2335_v8 = vpack.c.bf16 (!%p323_p2), %v395_v7, %v394_v6  ;;  %v396_v9 = vld [vmem:[%s3235_s4 + $0x30] sm:$0xff] (!%p323_p2)  ;;  %v397_v10 = vld [vmem:[%s3235_s4 + $0x38] sm:$0xff] (!%p323_p2)  ;;  %v398_v13 = vld [vmem:[%s3235_s4 + $0x40] sm:$0xff] (!%p323_p2) }
   0x8   : > { %2328 = vmatprep.subr.bf16.mxu0 (!%p323_p2), %v2327_v3  ;;  %v2339_v12 = vpack.c.bf16 (!%p323_p2), %v397_v10, %v396_v9  ;;  %v399_v14 = vld [vmem:[%s3235_s4 + $0x48] sm:$0xff] (!%p323_p2)  ;;  %v400_v16 = vld [vmem:[%s3235_s4 + $0x50] sm:$0xff] (!%p323_p2)  ;;  %v401_v17 = vld [vmem:[%s3235_s4 + $0x58] sm:$0xff] (!%p323_p2) }
   0x9   : > { %2330 = vmatpush3.bf16.msra.mxu0 (!%p323_p2), %v2327_v3  ;;  %v2343_v15 = vpack.c.bf16 (!%p323_p2), %v399_v14, %v398_v13  ;;  %v2347_v18 = vpack.c.bf16 (!%p323_p2), %v401_v17, %v400_v16  ;;  %v402_v19 = vld [vmem:[%s3235_s4 + $0x60] sm:$0xff] (!%p323_p2)  ;;  %v403_v20 = vld [vmem:[%s3235_s4 + $0x68] sm:$0xff] (!%p323_p2)  ;;  %v404_v22 = vld [vmem:[%s3235_s4 + $0x70] sm:$0xff] (!%p323_p2) }
   0xa   : > { %2332 = vmatprep.subr.bf16.mxu0 (!%p323_p2), %v2331_v5  ;;  %v2351_v21 = vpack.c.bf16 (!%p323_p2), %v403_v20, %v402_v19  ;;  %v405_v23 = vld [vmem:[%s3235_s4 + $0x78] sm:$0xff] (!%p323_p2)  ;;  %v1722_v31 = vld [vmem:[%s3236_s5] ss:$0 sm:$0xff] (!%p323_p2)  ;;  %v2740_v35 = vld [vmem:[%s3234_s3 + $0x8] sm:$0xff] (!%p323_p2) }
   0xb   : > { %v2355_v24 = vpack.c.bf16 (!%p323_p2), %v405_v23, %v404_v22  ;;  %v2745_v38 = vld [vmem:[%s3234_s3] sm:$0xff] (!%p323_p2)  ;;  %v2756_v45 = vld [vmem:[%s3234_s3 + $0x18] sm:$0xff] (!%p323_p2)  ;;  %v2761_v48 = vld [vmem:[%s3234_s3 + $0x10] sm:$0xff] (!%p323_p2) }
   0xc   : > { %v2774_v56 = vld [vmem:[%s3234_s3 + $0x28] sm:$0xff] (!%p323_p2)  ;;  %v2779_v59 = vld [vmem:[%s3234_s3 + $0x20] sm:$0xff] (!%p323_p2)  ;;  %v648_v4 = vld [vmem:[%s3237_s6 + $0x10] sm:$0xff] (!%p323_p2) }
   0xd   : > { %s3243_s14 = smov (!%p364_p3, %s1714_s14), 1  ;;  %2334 = vmatpush3.bf16.msra.mxu0 %v2331_v5  ;;  %v646_v63 = vld [vmem:[%s3237_s6] sm:$0xff]  ;;  %v647_v0 = vld [vmem:[%s3237_s6 + $0x8] sm:$0xff]  ;;  %v649_v5 = vld [vmem:[%s3237_s6 + $0x18] sm:$0xff] }
   0xe   : > { %s2568_s27 = smul.u32 48, %s3243_s14  ;;  %2336 = vmatprep.subr.bf16.mxu0 %v2335_v8  ;;  %v2371_v3 = vpack.c.bf16 %v647_v0, %v646_v63  ;;  %v650_v9 = vld [vmem:[%s3237_s6 + $0x20] sm:$0xff]  ;;  %v651_v10 = vld [vmem:[%s3237_s6 + $0x28] sm:$0xff]  ;;  %v652_v14 = vld [vmem:[%s3237_s6 + $0x30] sm:$0xff]  ;;  %s1721_s25 = sshll.u32 %s3243_s14, 1 }
   0xf   : > { %v2379_v13 = vpack.c.bf16 %v651_v10, %v650_v9  ;;  %v655_v19 = vld [vmem:[%s3237_s6 + $0x48] sm:$0xff]  ;;  %v657_v22 = vld [vmem:[%s3237_s6 + $0x58] sm:$0xff]  ;;  %s377_s29 = scalar_lea.vmem %s3241_s10, %s1721_s25 }
  0x10   : > { %s2688_s16 = scalar_lea.vmem %s3231_s0, %s2568_s27  ;;  %s2725_s19 = scalar_lea.vmem %s3232_s1, %s2568_s27 }
  0x11   : > { %v384_v11 = vld [vmem:[%s2688_s16] sm:$0xff]  ;;  %2338 = vmatpush3.bf16.msra.mxu0 %v2335_v8  ;;  %v385_v25 = vld [vmem:[%s2688_s16 + $0x8] sm:$0xff]  ;;  %v386_v26 = vld [vmem:[%s2688_s16 + $0x10] sm:$0xff]  ;;  %v2375_v8 = vpack.c.bf16 %v649_v5, %v648_v4 }
  0x12   : > { %2020 = vmatprep.mubr.f32.mxu0 %v384_v11  ;;  %2340 = vmatprep.subr.bf16.mxu0 %v2339_v12  ;;  %v387_v27 = vld [vmem:[%s2688_s16 + $0x18] sm:$0xff]  ;;  %v388_v28 = vld [vmem:[%s2688_s16 + $0x20] sm:$0xff]  ;;  %v389_v29 = vld [vmem:[%s2688_s16 + $0x28] sm:$0xff] }
  0x13   : > { %v2728_v30 = vld [vmem:[%s2725_s19] sm:$0xff]  ;;  %v2804_v6 = vld [vmem:[%s2725_s19 + $0x8] sm:$0xff]  ;;  %v2807_v7 = vld [vmem:[%s2725_s19 + $0x10] sm:$0xff] }
  0x14   : > { %2041 = vmatprep.mubr.msk.f32.mxu1 %vm526_vm0, %v2728_v30  ;;  %v2820_v11 = vld [vmem:[%s2725_s19 + $0x18] sm:$0xff]  ;;  %v2836_v16 = vld [vmem:[%s2725_s19 + $0x28] sm:$0xff] }
  0x15   : > { %2342 = vmatpush3.bf16.msra.mxu0 %v2339_v12  ;;  %v2823_v12 = vld [vmem:[%s2725_s19 + $0x20] sm:$0xff] }
  0x16   : > { %2344 = vmatprep.subr.bf16.mxu0 %v2343_v15 }
  0x19   : > { %2346 = vmatpush3.bf16.msra.mxu0 %v2343_v15  ;;  %v653_v15 = vld [vmem:[%s3237_s6 + $0x38] sm:$0xff] }
  0x1a   : > { %2348 = vmatprep.subr.bf16.mxu0 %v2347_v18  ;;  %v2383_v17 = vpack.c.bf16 %v653_v15, %v652_v14  ;;  %v1736_v15 = vld [vmem:[%s3237_s6 + $0x80] sm:$0xff] }
  0x1d   : > { %2350 = vmatpush3.bf16.msra.mxu0 %v2347_v18  ;;  %v654_v18 = vld [vmem:[%s3237_s6 + $0x40] sm:$0xff] }
  0x1e   : > { %2352 = vmatprep.subr.bf16.mxu0 %v2351_v21  ;;  %v2387_v20 = vpack.c.bf16 %v655_v19, %v654_v18 }
  0x21   : > { %2354 = vmatpush3.bf16.msra.mxu0 %v2351_v21  ;;  %v656_v21 = vld [vmem:[%s3237_s6 + $0x50] sm:$0xff] }
  0x22   : > { %2356 = vmatprep.subr.bf16.mxu0 %v2355_v24  ;;  %v2391_v23 = vpack.c.bf16 %v657_v22, %v656_v21  ;;  %v1738_v21 = vld [vmem:[%s3237_s6 + $0x90] sm:$0xff]  ;;  %v1739_v22 = vld [vmem:[%s3237_s6 + $0x98] sm:$0xff] }
  0x25   : > { %2358 = vmatpush3.bf16.msra.mxu0 %v2355_v24  ;;  %v658_v24 = vld [vmem:[%s3237_s6 + $0x60] sm:$0xff] }
  0x28   : > { %2021 = vmatmul.mubr.f32.vlgmr.msra.gmra.mrb[0].mxu0 %v385_v25  ;;  %v659_v25 = vld [vmem:[%s3237_s6 + $0x68] sm:$0xff] }
  0x29   : > { %2023 = vmatprep.mubr.f32.mxu0 %v386_v26  ;;  %v2395_v26 = vpack.c.bf16 %v659_v25, %v658_v24  ;;  %v1740_v24 = vld [vmem:[%s3237_s6 + $0xa0] sm:$0xff]  ;;  %v1741_v25 = vld [vmem:[%s3237_s6 + $0xa8] sm:$0xff] }
  0x2c   : > { %2024 = vmatmul.mubr.f32.gmra.mrb[2].mxu0 %v387_v27  ;;  %v660_v27 = vld [vmem:[%s3237_s6 + $0x70] sm:$0xff] }
  0x2d   : > { %2026 = vmatprep.mubr.f32.mxu0 %v388_v28  ;;  %v661_v28 = vld [vmem:[%s3237_s6 + $0x78] sm:$0xff] }
  0x30   : > { %2027 = vmatmul.mubr.f32.gmra.mrb[4].mxu0 %v389_v29  ;;  %v2399_v29 = vpack.c.bf16 %v661_v28, %v660_v27  ;;  %v1742_v27 = vld [vmem:[%s3237_s6 + $0xb0] sm:$0xff]  ;;  %v1743_v28 = vld [vmem:[%s3237_s6 + $0xb8] sm:$0xff] }
  0x31   : > { %2103 = vmatprep.mubr.msk.f32.mxu0 %vm526_vm0, %v2728_v30 }
  0xfb   : > { %v2022_v32 = vpop.f32.mrb[0].mxu0 }
  0xfc   : > { %v485_v33 = vadd.f32 %v2022_v32, %v1722_v31  ;;  %v479_v34 = vpop.f32.mrb[1].mxu0 }
  0xfd   : > { %v480_v36 = vadd.f32 %v1722_v31, %v479_v34 }
  0xfe   : > { %v509_v37 = vmax.f32 %v485_v33, 0.0 }
  0xff   : > { %v508_v39 = vmax.f32 %v480_v36, 0.0  ;;  %v2025_v40 = vpop.f32.mrb[2].mxu0 }
 0x100   : > { %v2748_v41 = vmul.f32 %v509_v37, %v2740_v35  ;;  %v495_v42 = vadd.f32 %v2025_v40, %v1722_v31  ;;  %v489_v43 = vpop.f32.mrb[3].mxu0 }
 0x101   : > { %v2751_v44 = vmul.f32 %v508_v39, %v2745_v38  ;;  %v490_v46 = vadd.f32 %v1722_v31, %v489_v43 }
 0x102   : > { %v511_v47 = vmax.f32 %v495_v42, 0.0 }
 0x103   : > { %v510_v49 = vmax.f32 %v490_v46, 0.0  ;;  %v2028_v50 = vpop.f32.mrb[4].mxu0  ;;  %v2359_v51 = vpack.c.bf16 %v2748_v41, %v2751_v44 }
 0x104   : > { %v2766_v52 = vmul.f32 %v511_v47, %v2756_v45  ;;  %v505_v53 = vadd.f32 %v2028_v50, %v1722_v31  ;;  %v499_v54 = vpop.f32.mrb[5].mxu0 }
 0x105   : > { %v2769_v55 = vmul.f32 %v510_v49, %v2761_v48  ;;  %v500_v57 = vadd.f32 %v1722_v31, %v499_v54  ;;  %2360 = vmatprep.subr.bf16.mxu1 %v2359_v51 }
 0x106   : > { %v513_v58 = vmax.f32 %v505_v53, 0.0  ;;  %2362 = vmatpush3.bf16.msra.mxu1 %v2359_v51 }
 0x107   : > { %v512_v60 = vmax.f32 %v500_v57, 0.0  ;;  %v2363_v61 = vpack.c.bf16 %v2766_v52, %v2769_v55 }
 0x108   : > { %v2784_v62 = vmul.f32 %v513_v58, %v2774_v56 }
 0x109   : > { %v2793_v1 = vmul.f32 %v512_v60, %v2779_v59  ;;  %2364 = vmatprep.subr.bf16.mxu1 %v2363_v61 }
 0x10a   : > { %2366 = vmatpush3.bf16.msra.mxu1 %v2363_v61 }
 0x10b   : > { %v2367_v2 = vpack.c.bf16 %v2784_v62, %v2793_v1 }
 0x10d   : > { %2368 = vmatprep.subr.bf16.mxu1 %v2367_v2 }
 0x10e   : > { %2370 = vmatpush3.bf16.msra.mxu1 %v2367_v2 }
 0x10f   : > { %2372 = vmatprep.subr.bf16.mxu1 %v2371_v3 }
 0x111   : > { %2042 = vmatmul.mubr.msk.f32.vlgmr.msra.gmra.mrb[0].mxu1 %vm526_vm0, %v2804_v6 }
 0x112   : > { %2044 = vmatprep.mubr.msk.f32.mxu1 %vm526_vm0, %v2807_v7  ;;  %2374 = vmatpush3.bf16.msra.mxu1 %v2371_v3 }
 0x113   : > { %2376 = vmatprep.subr.bf16.mxu1 %v2375_v8 }
 0x115   : > { %2045 = vmatmul.mubr.msk.f32.gmra.mrb[2].mxu1 %vm526_vm0, %v2820_v11 }
 0x116   : > { %2047 = vmatprep.mubr.msk.f32.mxu1 %vm526_vm0, %v2823_v12  ;;  %2378 = vmatpush3.bf16.msra.mxu1 %v2375_v8 }
 0x117   : > { %2380 = vmatprep.subr.bf16.mxu1 %v2379_v13 }
 0x119   : > { %2048 = vmatmul.mubr.msk.f32.gmra.mrb[4].mxu1 %vm526_vm0, %v2836_v16 }
 0x11a   : > { %2382 = vmatpush3.bf16.msra.mxu1 %v2379_v13 }
 0x11b   : > { %2384 = vmatprep.subr.bf16.mxu1 %v2383_v17 }
 0x11e   : > { %2386 = vmatpush3.bf16.msra.mxu1 %v2383_v17  ;;  %v1737_v17 = vld [vmem:[%s3237_s6 + $0x88] sm:$0xff] }
 0x11f   : > { %2388 = vmatprep.subr.bf16.mxu1 %v2387_v20 }
 0x122   : > { %2390 = vmatpush3.bf16.msra.mxu1 %v2387_v20  ;;  %v2415_v20 = vpack.c.bf16 %v1737_v17, %v1736_v15 }
 0x123   : > { %2392 = vmatprep.subr.bf16.mxu1 %v2391_v23 }
 0x126   : > { %2394 = vmatpush3.bf16.msra.mxu1 %v2391_v23  ;;  %v2419_v23 = vpack.c.bf16 %v1739_v22, %v1738_v21 }
 0x127   : > { %2396 = vmatprep.subr.bf16.mxu1 %v2395_v26 }
 0x12a   : > { %2398 = vmatpush3.bf16.msra.mxu1 %v2395_v26  ;;  %v2423_v26 = vpack.c.bf16 %v1741_v25, %v1740_v24 }
 0x12b   : > { %2400 = vmatprep.subr.bf16.mxu1 %v2399_v29 }
 0x12e   : > { %2402 = vmatpush3.bf16.msra.mxu1 %v2399_v29  ;;  %v2427_v29 = vpack.c.bf16 %v1743_v28, %v1742_v27  ;;  %v1760_v27 = vld [vmem:[%s3237_s6 + $0x100] sm:$0xff]  ;;  %v1761_v28 = vld [vmem:[%s3237_s6 + $0x108] sm:$0xff] }
 0x1e4   : > { %v2043_v31 = vpop.f32.mrb[0].mxu1 }
 0x1e5   : > { %v611_v32 = vpop.f32.mrb[1].mxu1  ;;  %v641_v34 = vadd.f32 %v2043_v31, %v2748_v41  ;;  %v1729_v41 = vld [vmem:[%s3238_s7] ss:$0 sm:$0xff] }
 0x1e6   : > { %v640_v33 = vadd.f32 %v611_v32, %v2751_v44  ;;  %v1744_v31 = vld [vmem:[%s3237_s6 + $0xc0] sm:$0xff]  ;;  %v1745_v32 = vld [vmem:[%s3237_s6 + $0xc8] sm:$0xff] }
 0x1e8   : > { %v2046_v36 = vpop.f32.mrb[2].mxu1  ;;  %2082 = vmatprep.mubr.f32.mxu1 %v640_v33  ;;  %v2431_v33 = vpack.c.bf16 %v1745_v32, %v1744_v31  ;;  %v2459_v32 = vpack.c.bf16 %v1761_v28, %v1760_v27 }
 0x1e9   : > { %v621_v37 = vpop.f32.mrb[3].mxu1  ;;  %2083 = vmatmul.mubr.f32.vlgmr.msra.gmra.mrb[6].mxu1 %v641_v34  ;;  %v643_v40 = vadd.f32 %v2046_v36, %v2766_v52  ;;  %v1746_v34 = vld [vmem:[%s3237_s6 + $0xd0] sm:$0xff]  ;;  %v1747_v36 = vld [vmem:[%s3237_s6 + $0xd8] sm:$0xff] }
 0x1ea   : > { %v642_v39 = vadd.f32 %v621_v37, %v2769_v55  ;;  %v2435_v37 = vpack.c.bf16 %v1747_v36, %v1746_v34  ;;  %v1763_v34 = vld [vmem:[%s3237_s6 + $0x118] sm:$0xff] }
 0x1ec   : > { %v2049_v42 = vpop.f32.mrb[4].mxu1  ;;  %2085 = vmatprep.mubr.f32.mxu1 %v642_v39  ;;  %v1748_v39 = vld [vmem:[%s3237_s6 + $0xe0] sm:$0xff] }
 0x1ed   : > { %v631_v43 = vpop.f32.mrb[5].mxu1  ;;  %2086 = vmatmul.mubr.f32.gmra.mrb[8].mxu1 %v643_v40  ;;  %v645_v47 = vadd.f32 %v2049_v42, %v2784_v62  ;;  %v1749_v40 = vld [vmem:[%s3237_s6 + $0xe8] sm:$0xff] }
 0x1ee   : > { %v644_v46 = vadd.f32 %v631_v43, %v2793_v1  ;;  %v2439_v42 = vpack.c.bf16 %v1749_v40, %v1748_v39  ;;  %v1750_v43 = vld [vmem:[%s3237_s6 + $0xf0] sm:$0xff]  ;;  %v1765_v39 = vld [vmem:[%s3237_s6 + $0x128] sm:$0xff] }
 0x1f0   : > { %2088 = vmatprep.mubr.f32.mxu1 %v644_v46  ;;  %v1751_v46 = vld [vmem:[%s3237_s6 + $0xf8] sm:$0xff] }
 0x1f1   : > { %2089 = vmatmul.mubr.f32.gmra.mrb[10].mxu1 %v645_v47  ;;  %v2443_v47 = vpack.c.bf16 %v1751_v46, %v1750_v43  ;;  %v1767_v43 = vld [vmem:[%s3237_s6 + $0x138] sm:$0xff] }
 0x1f2   : > { %2165 = vmatprep.mubr.msk.f32.mxu1 %vm526_vm0, %v2728_v30 }
 0x2bc   : > { %v2084_v44 = vpop.f32.mrb[6].mxu1 }
 0x2bd   : > { %v741_v49 = vadd.f32 %v2084_v44, %v1729_v41  ;;  %v735_v50 = vpop.f32.mrb[7].mxu1 }
 0x2be   : > { %v736_v51 = vadd.f32 %v1729_v41, %v735_v50 }
 0x2bf   : > { %v765_v52 = vmax.f32 %v741_v49, 0.0 }
 0x2c0   : > { %v764_v53 = vmax.f32 %v736_v51, 0.0  ;;  %v2087_v54 = vpop.f32.mrb[8].mxu1 }
 0x2c1   : > { %v2876_v55 = vmul.f32 %v765_v52, %v2740_v35  ;;  %v751_v57 = vadd.f32 %v2087_v54, %v1729_v41  ;;  %v745_v58 = vpop.f32.mrb[9].mxu1 }
 0x2c2   : > { %v2879_v60 = vmul.f32 %v764_v53, %v2745_v38  ;;  %v746_v61 = vadd.f32 %v1729_v41, %v745_v58 }
 0x2c3   : > { %v767_v62 = vmax.f32 %v751_v57, 0.0 }
 0x2c4   : > { %v766_v63 = vmax.f32 %v746_v61, 0.0  ;;  %v2090_v0 = vpop.f32.mrb[10].mxu1  ;;  %v2403_v1 = vpack.c.bf16 %v2876_v55, %v2879_v60 }
 0x2c5   : > { %v2884_v2 = vmul.f32 %v767_v62, %v2756_v45  ;;  %v761_v3 = vadd.f32 %v2090_v0, %v1729_v41  ;;  %v755_v4 = vpop.f32.mrb[11].mxu1 }
 0x2c6   : > { %v2887_v5 = vmul.f32 %v766_v63, %v2761_v48  ;;  %v756_v8 = vadd.f32 %v1729_v41, %v755_v4  ;;  %2404 = vmatprep.subr.bf16.mxu0 %v2403_v1 }
 0x2c7   : > { %v769_v9 = vmax.f32 %v761_v3, 0.0  ;;  %2406 = vmatpush3.bf16.msra.mxu0 %v2403_v1 }
 0x2c8   : > { %v768_v10 = vmax.f32 %v756_v8, 0.0  ;;  %v2407_v13 = vpack.c.bf16 %v2884_v2, %v2887_v5 }
 0x2c9   : > { %v2892_v14 = vmul.f32 %v769_v9, %v2774_v56 }
 0x2ca   : > { %v2901_v18 = vmul.f32 %v768_v10, %v2779_v59  ;;  %2408 = vmatprep.subr.bf16.mxu0 %v2407_v13 }
 0x2cb   : > { %2410 = vmatpush3.bf16.msra.mxu0 %v2407_v13 }
 0x2cc   : > { %v2411_v19 = vpack.c.bf16 %v2892_v14, %v2901_v18 }
 0x2ce   : > { %2412 = vmatprep.subr.bf16.mxu0 %v2411_v19 }
 0x2cf   : > { %2414 = vmatpush3.bf16.msra.mxu0 %v2411_v19 }
 0x2d0   : > { %2416 = vmatprep.subr.bf16.mxu0 %v2415_v20 }
 0x2d2   : > { %2104 = vmatmul.mubr.msk.f32.vlgmr.msra.gmra.mrb[6].mxu0 %vm526_vm0, %v2804_v6 }
 0x2d3   : > { %2106 = vmatprep.mubr.msk.f32.mxu0 %vm526_vm0, %v2807_v7  ;;  %2418 = vmatpush3.bf16.msra.mxu0 %v2415_v20 }
 0x2d4   : > { %2420 = vmatprep.subr.bf16.mxu0 %v2419_v23 }
 0x2d6   : > { %2107 = vmatmul.mubr.msk.f32.gmra.mrb[8].mxu0 %vm526_vm0, %v2820_v11 }
 0x2d7   : > { %2109 = vmatprep.mubr.msk.f32.mxu0 %vm526_vm0, %v2823_v12  ;;  %2422 = vmatpush3.bf16.msra.mxu0 %v2419_v23 }
 0x2d8   : > { %2424 = vmatprep.subr.bf16.mxu0 %v2423_v26 }
 0x2da   : > { %2110 = vmatmul.mubr.msk.f32.gmra.mrb[10].mxu0 %vm526_vm0, %v2836_v16 }
 0x2db   : > { %2426 = vmatpush3.bf16.msra.mxu0 %v2423_v26 }
 0x2dc   : > { %2428 = vmatprep.subr.bf16.mxu0 %v2427_v29 }
 0x2df   : > { %2430 = vmatpush3.bf16.msra.mxu0 %v2427_v29 }
 0x2e0   : > { %2432 = vmatprep.subr.bf16.mxu0 %v2431_v33 }
 0x2e3   : > { %2434 = vmatpush3.bf16.msra.mxu0 %v2431_v33  ;;  %v1762_v33 = vld [vmem:[%s3237_s6 + $0x110] sm:$0xff] }
 0x2e4   : > { %2436 = vmatprep.subr.bf16.mxu0 %v2435_v37  ;;  %v2463_v36 = vpack.c.bf16 %v1763_v34, %v1762_v33 }
 0x2e7   : > { %2438 = vmatpush3.bf16.msra.mxu0 %v2435_v37  ;;  %v1764_v37 = vld [vmem:[%s3237_s6 + $0x120] sm:$0xff] }
 0x2e8   : > { %2440 = vmatprep.subr.bf16.mxu0 %v2439_v42  ;;  %v2467_v40 = vpack.c.bf16 %v1765_v39, %v1764_v37 }
 0x2eb   : > { %2442 = vmatpush3.bf16.msra.mxu0 %v2439_v42  ;;  %v1766_v42 = vld [vmem:[%s3237_s6 + $0x130] sm:$0xff] }
 0x2ec   : > { %2444 = vmatprep.subr.bf16.mxu0 %v2443_v47  ;;  %v2471_v46 = vpack.c.bf16 %v1767_v43, %v1766_v42  ;;  %v1784_v42 = vld [vmem:[%s3237_s6 + $0x180] sm:$0xff]  ;;  %v1785_v43 = vld [vmem:[%s3237_s6 + $0x188] sm:$0xff] }
 0x2ef   : > { %2446 = vmatpush3.bf16.msra.mxu0 %v2443_v47  ;;  %v1768_v47 = vld [vmem:[%s3237_s6 + $0x140] sm:$0xff] }
 0x3a5   : > { %v2105_v41 = vpop.f32.mrb[6].mxu0 }
 0x3a6   : > { %v842_v44 = vpop.f32.mrb[7].mxu0  ;;  %v872_v50 = vadd.f32 %v2105_v41, %v2876_v55  ;;  %v1753_v55 = vld [vmem:[%s3238_s7 + $0x1] ss:$0 sm:$0xff]  ;;  %v1769_v41 = vld [vmem:[%s3237_s6 + $0x148] sm:$0xff] }
 0x3a7   : > { %v871_v49 = vadd.f32 %v842_v44, %v2879_v60  ;;  %v2475_v44 = vpack.c.bf16 %v1769_v41, %v1768_v47  ;;  %v2503_v41 = vpack.c.bf16 %v1785_v43, %v1784_v42 }
 0x3a9   : > { %v2108_v51 = vpop.f32.mrb[8].mxu0  ;;  %2144 = vmatprep.mubr.f32.mxu0 %v871_v49  ;;  %v1770_v49 = vld [vmem:[%s3237_s6 + $0x150] sm:$0xff] }
 0x3aa   : > { %v852_v52 = vpop.f32.mrb[9].mxu0  ;;  %2145 = vmatmul.mubr.f32.vlgmr.msra.gmra.mrb[12].mxu0 %v872_v50  ;;  %v874_v54 = vadd.f32 %v2108_v51, %v2884_v2  ;;  %v1771_v50 = vld [vmem:[%s3237_s6 + $0x158] sm:$0xff] }
 0x3ab   : > { %v873_v53 = vadd.f32 %v852_v52, %v2887_v5  ;;  %v2479_v51 = vpack.c.bf16 %v1771_v50, %v1770_v49  ;;  %v1772_v52 = vld [vmem:[%s3237_s6 + $0x160] sm:$0xff]  ;;  %v1787_v49 = vld [vmem:[%s3237_s6 + $0x198] sm:$0xff] }
 0x3ad   : > { %v2111_v57 = vpop.f32.mrb[10].mxu0  ;;  %2147 = vmatprep.mubr.f32.mxu0 %v873_v53  ;;  %v1773_v53 = vld [vmem:[%s3237_s6 + $0x168] sm:$0xff] }
 0x3ae   : > { %v862_v58 = vpop.f32.mrb[11].mxu0  ;;  %2148 = vmatmul.mubr.f32.gmra.mrb[14].mxu0 %v874_v54  ;;  %v876_v62 = vadd.f32 %v2111_v57, %v2892_v14  ;;  %v2483_v54 = vpack.c.bf16 %v1773_v53, %v1772_v52  ;;  %v1774_v57 = vld [vmem:[%s3237_s6 + $0x170] sm:$0xff]  ;;  %v1789_v52 = vld [vmem:[%s3237_s6 + $0x1a8] sm:$0xff] }
 0x3af   : > { %v875_v61 = vadd.f32 %v862_v58, %v2901_v18  ;;  %v1775_v58 = vld [vmem:[%s3237_s6 + $0x178] sm:$0xff] }
 0x3b1   : > { %2150 = vmatprep.mubr.f32.mxu0 %v875_v61  ;;  %v2487_v61 = vpack.c.bf16 %v1775_v58, %v1774_v57  ;;  %v1791_v57 = vld [vmem:[%s3237_s6 + $0x1b8] sm:$0xff]  ;;  %v1793_v58 = vld [vmem:[%s3237_s6 + $0x1c8] sm:$0xff] }
 0x3b2   : > { %2151 = vmatmul.mubr.f32.gmra.mrb[16].mxu0 %v876_v62 }
 0x3b3   : > { %2227 = vmatprep.mubr.msk.f32.mxu0 %vm526_vm0, %v2728_v30 }
 0x47d   : > { %v2146_v60 = vpop.f32.mrb[12].mxu0 }
 0x47e   : > { %v974_v63 = vadd.f32 %v2146_v60, %v1753_v55  ;;  %v968_v0 = vpop.f32.mrb[13].mxu0 }
 0x47f   : > { %v969_v1 = vadd.f32 %v1753_v55, %v968_v0 }
 0x480   : > { %v998_v2 = vmax.f32 %v974_v63, 0.0 }
 0x481   : > { %v997_v3 = vmax.f32 %v969_v1, 0.0  ;;  %v2149_v4 = vpop.f32.mrb[14].mxu0 }
 0x482   : > { %v2969_v5 = vmul.f32 %v998_v2, %v2740_v35  ;;  %v984_v8 = vadd.f32 %v2149_v4, %v1753_v55  ;;  %v978_v9 = vpop.f32.mrb[15].mxu0 }
 0x483   : > { %v2972_v10 = vmul.f32 %v997_v3, %v2745_v38  ;;  %v979_v30 = vadd.f32 %v1753_v55, %v978_v9 }
 0x484   : > { %v1000_v13 = vmax.f32 %v984_v8, 0.0 }
 0x485   : > { %v999_v14 = vmax.f32 %v979_v30, 0.0  ;;  %v2152_v15 = vpop.f32.mrb[16].mxu0  ;;  %v2447_v17 = vpack.c.bf16 %v2969_v5, %v2972_v10 }
 0x486   : > { %v2977_v18 = vmul.f32 %v1000_v13, %v2756_v45  ;;  %v994_v19 = vadd.f32 %v2152_v15, %v1753_v55  ;;  %v988_v20 = vpop.f32.mrb[17].mxu0 }
 0x487   : > { %v2980_v21 = vmul.f32 %v999_v14, %v2761_v48  ;;  %v989_v22 = vadd.f32 %v1753_v55, %v988_v20  ;;  %2448 = vmatprep.subr.bf16.mxu1 %v2447_v17 }
 0x488   : > { %v1002_v23 = vmax.f32 %v994_v19, 0.0  ;;  %2450 = vmatpush3.bf16.msra.mxu1 %v2447_v17 }
 0x489   : > { %v1001_v24 = vmax.f32 %v989_v22, 0.0  ;;  %v2451_v25 = vpack.c.bf16 %v2977_v18, %v2980_v21 }
 0x48a   : > { %v2985_v26 = vmul.f32 %v1002_v23, %v2774_v56 }
 0x48b   : > { %v2994_v29 = vmul.f32 %v1001_v24, %v2779_v59  ;;  %2452 = vmatprep.subr.bf16.mxu1 %v2451_v25 }
 0x48c   : > { %2454 = vmatpush3.bf16.msra.mxu1 %v2451_v25 }
 0x48d   : > { %v2455_v31 = vpack.c.bf16 %v2985_v26, %v2994_v29 }
 0x48f   : > { %2456 = vmatprep.subr.bf16.mxu1 %v2455_v31 }
 0x490   : > { %2458 = vmatpush3.bf16.msra.mxu1 %v2455_v31 }
 0x491   : > { %2460 = vmatprep.subr.bf16.mxu1 %v2459_v32 }
 0x493   : > { %2166 = vmatmul.mubr.msk.f32.vlgmr.msra.gmra.mrb[12].mxu1 %vm526_vm0, %v2804_v6 }
 0x494   : > { %2168 = vmatprep.mubr.msk.f32.mxu1 %vm526_vm0, %v2807_v7  ;;  %2462 = vmatpush3.bf16.msra.mxu1 %v2459_v32 }
 0x495   : > { %2464 = vmatprep.subr.bf16.mxu1 %v2463_v36 }
 0x497   : > { %2169 = vmatmul.mubr.msk.f32.gmra.mrb[14].mxu1 %vm526_vm0, %v2820_v11 }
 0x498   : > { %2171 = vmatprep.mubr.msk.f32.mxu1 %vm526_vm0, %v2823_v12  ;;  %2466 = vmatpush3.bf16.msra.mxu1 %v2463_v36 }
 0x499   : > { %2468 = vmatprep.subr.bf16.mxu1 %v2467_v40 }
 0x49b   : > { %2172 = vmatmul.mubr.msk.f32.gmra.mrb[16].mxu1 %vm526_vm0, %v2836_v16 }
 0x49c   : > { %2470 = vmatpush3.bf16.msra.mxu1 %v2467_v40 }
 0x49d   : > { %2472 = vmatprep.subr.bf16.mxu1 %v2471_v46 }
 0x4a0   : > { %2474 = vmatpush3.bf16.msra.mxu1 %v2471_v46 }
 0x4a1   : > { %2476 = vmatprep.subr.bf16.mxu1 %v2475_v44 }
 0x4a4   : > { %2478 = vmatpush3.bf16.msra.mxu1 %v2475_v44  ;;  %v1786_v44 = vld [vmem:[%s3237_s6 + $0x190] sm:$0xff] }
 0x4a5   : > { %2480 = vmatprep.subr.bf16.mxu1 %v2479_v51  ;;  %v2507_v50 = vpack.c.bf16 %v1787_v49, %v1786_v44 }
 0x4a8   : > { %2482 = vmatpush3.bf16.msra.mxu1 %v2479_v51  ;;  %v1788_v51 = vld [vmem:[%s3237_s6 + $0x1a0] sm:$0xff] }
 0x4a9   : > { %2484 = vmatprep.subr.bf16.mxu1 %v2483_v54  ;;  %v2511_v53 = vpack.c.bf16 %v1789_v52, %v1788_v51  ;;  %v1475_v51 = vld [vmem:[%s3233_s2] sm:$0x3]  ;;  %v1552_v52 = vld [vmem:[%s3239_s8 + $0x18] sm:$0xff] }
 0x4ac   : > { %2486 = vmatpush3.bf16.msra.mxu1 %v2483_v54  ;;  %v1790_v54 = vld [vmem:[%s3237_s6 + $0x1b0] sm:$0xff] }
 0x4ad   : > { %2488 = vmatprep.subr.bf16.mxu1 %v2487_v61 }
 0x4b0   : > { %2490 = vmatpush3.bf16.msra.mxu1 %v2487_v61  ;;  %v1795_v61 = vld [vmem:[%s3237_s6 + $0x1d8] sm:$0xff] }
 0x566   : > { %v2167_v62 = vpop.f32.mrb[12].mxu1 }
 0x567   : > { %v1075_v55 = vpop.f32.mrb[13].mxu1  ;;  %v1105_v63 = vadd.f32 %v2167_v62, %v2969_v5  ;;  %v1777_v5 = vld [vmem:[%s3238_s7 + $0x2] ss:$0 sm:$0xff] }
 0x568   : > { %v1104_v60 = vadd.f32 %v1075_v55, %v2972_v10  ;;  %v1796_v55 = vld [vmem:[%s3237_s6 + $0x1e0] sm:$0xff] }
 0x56a   : > { %v2170_v0 = vpop.f32.mrb[14].mxu1  ;;  %2206 = vmatprep.mubr.f32.mxu1 %v1104_v60 }
 0x56b   : > { %v1085_v1 = vpop.f32.mrb[15].mxu1  ;;  %2207 = vmatmul.mubr.f32.vlgmr.msra.gmra.mrb[18].mxu1 %v1105_v63  ;;  %v1107_v3 = vadd.f32 %v2170_v0, %v2977_v18  ;;  %v1798_v63 = vld [vmem:[%s3237_s6 + $0x1f0] sm:$0xff]  ;;  %v1799_v0 = vld [vmem:[%s3237_s6 + $0x1f8] sm:$0xff] }
 0x56c   : > { %v1106_v2 = vadd.f32 %v1085_v1, %v2980_v21  ;;  %v2531_v1 = vpack.c.bf16 %v1799_v0, %v1798_v63  ;;  %v1561_v63 = vld [vmem:[%s3239_s8 + $0x60] sm:$0xff]  ;;  %v1562_v0 = vld [vmem:[%s3239_s8 + $0x68] sm:$0xff] }
 0x56e   : > { %v2173_v4 = vpop.f32.mrb[16].mxu1  ;;  %2209 = vmatprep.mubr.f32.mxu1 %v1106_v2 }
 0x56f   : > { %v1095_v8 = vpop.f32.mrb[17].mxu1  ;;  %2210 = vmatmul.mubr.f32.gmra.mrb[20].mxu1 %v1107_v3  ;;  %v1109_v30 = vadd.f32 %v2173_v4, %v2985_v26 }
 0x570   : > { %v1108_v9 = vadd.f32 %v1095_v8, %v2994_v29 }
 0x572   : > { %2212 = vmatprep.mubr.f32.mxu1 %v1108_v9 }
 0x573   : > { %2213 = vmatmul.mubr.f32.gmra.mrb[22].mxu1 %v1109_v30 }
 0x63e   : > { %v2208_v10 = vpop.f32.mrb[18].mxu1 }
 0x63f   : > { %v1207_v13 = vadd.f32 %v2208_v10, %v1777_v5  ;;  %v1201_v14 = vpop.f32.mrb[19].mxu1 }
 0x640   : > { %v1202_v15 = vadd.f32 %v1777_v5, %v1201_v14 }
 0x641   : > { %v1231_v17 = vmax.f32 %v1207_v13, 0.0 }
 0x642   : > { %v1230_v18 = vmax.f32 %v1202_v15, 0.0  ;;  %v2211_v19 = vpop.f32.mrb[20].mxu1 }
 0x643   : > { %v3060_v20 = vmul.f32 %v1231_v17, %v2740_v35  ;;  %v1217_v21 = vadd.f32 %v2211_v19, %v1777_v5  ;;  %v1211_v22 = vpop.f32.mrb[21].mxu1  ;;  %v2592_v19 = vmov 0.0  }
 0x644   : > { %v3063_v23 = vmul.f32 %v1230_v18, %v2745_v38  ;;  %v1212_v24 = vadd.f32 %v1777_v5, %v1211_v22  ;;  %v2590_v18 = vmov 0.0|0.0   ;;  %2289 = vmatprep.mubr.msk.f32.mxu1 %vm2591_vm1, %v2592_v19 }
 0x645   : > { %v1233_v25 = vmax.f32 %v1217_v21, 0.0  ;;  %2535 = vmatprep.subr.bf16.mxu1 %v2590_v18 }
 0x646   : > { %v1232_v26 = vmax.f32 %v1212_v24, 0.0  ;;  %v2214_v27 = vpop.f32.mrb[22].mxu1  ;;  %v2491_v28 = vpack.c.bf16 %v3060_v20, %v3063_v23 }
 0x647   : > { %v3068_v29 = vmul.f32 %v1233_v25, %v2756_v45  ;;  %v1227_v31 = vadd.f32 %v2214_v27, %v1777_v5  ;;  %v1221_v32 = vpop.f32.mrb[23].mxu1 }
 0x648   : > { %v3071_v33 = vmul.f32 %v1232_v26, %v2761_v48  ;;  %v1222_v34 = vadd.f32 %v1777_v5, %v1221_v32  ;;  %2492 = vmatprep.subr.bf16.mxu0 %v2491_v28 }
 0x649   : > { %v1235_v36 = vmax.f32 %v1227_v31, 0.0  ;;  %2494 = vmatpush3.bf16.msra.mxu0 %v2491_v28 }
 0x64a   : > { %v1234_v37 = vmax.f32 %v1222_v34, 0.0  ;;  %v2495_v39 = vpack.c.bf16 %v3068_v29, %v3071_v33 }
 0x64b   : > { %v3076_v40 = vmul.f32 %v1235_v36, %v2774_v56 }
 0x64c   : > { %v3085_v46 = vmul.f32 %v1234_v37, %v2779_v59  ;;  %2496 = vmatprep.subr.bf16.mxu0 %v2495_v39 }
 0x64d   : > { %2498 = vmatpush3.bf16.msra.mxu0 %v2495_v39 }
 0x64e   : > { %v2499_v47 = vpack.c.bf16 %v3076_v40, %v3085_v46 }
 0x650   : > { %2500 = vmatprep.subr.bf16.mxu0 %v2499_v47 }
 0x651   : > { %2502 = vmatpush3.bf16.msra.mxu0 %v2499_v47 }
 0x652   : > { %2504 = vmatprep.subr.bf16.mxu0 %v2503_v41 }
 0x654   : > { %2228 = vmatmul.mubr.msk.f32.vlgmr.msra.gmra.mrb[18].mxu0 %vm526_vm0, %v2804_v6  ;;  %v2515_v6 = vpack.c.bf16 %v1791_v57, %v1790_v54  ;;  %v1553_v54 = vld [vmem:[%s3239_s8 + $0x20] sm:$0xff]  ;;  %v1554_v57 = vld [vmem:[%s3239_s8 + $0x28] sm:$0xff] }
 0x655   : > { %2230 = vmatprep.mubr.msk.f32.mxu0 %vm526_vm0, %v2807_v7  ;;  %2506 = vmatpush3.bf16.msra.mxu0 %v2503_v41  ;;  %v1792_v7 = vld [vmem:[%s3237_s6 + $0x1c0] sm:$0xff] }
 0x656   : > { %2508 = vmatprep.subr.bf16.mxu0 %v2507_v50 }
 0x658   : > { %2231 = vmatmul.mubr.msk.f32.gmra.mrb[20].mxu0 %vm526_vm0, %v2820_v11  ;;  %v2519_v11 = vpack.c.bf16 %v1793_v58, %v1792_v7  ;;  %v1555_v7 = vld [vmem:[%s3239_s8 + $0x30] sm:$0xff]  ;;  %v1556_v58 = vld [vmem:[%s3239_s8 + $0x38] sm:$0xff] }
 0x659   : > { %2233 = vmatprep.mubr.msk.f32.mxu0 %vm526_vm0, %v2823_v12  ;;  %2510 = vmatpush3.bf16.msra.mxu0 %v2507_v50  ;;  %v1794_v12 = vld [vmem:[%s3237_s6 + $0x1d0] sm:$0xff] }
 0x65a   : > { %2512 = vmatprep.subr.bf16.mxu0 %v2511_v53  ;;  %v2523_v62 = vpack.c.bf16 %v1795_v61, %v1794_v12  ;;  %v1557_v12 = vld [vmem:[%s3239_s8 + $0x40] sm:$0xff]  ;;  %v1558_v61 = vld [vmem:[%s3239_s8 + $0x48] sm:$0xff] }
 0x65c   : > { %2234 = vmatmul.mubr.msk.f32.gmra.mrb[22].mxu0 %vm526_vm0, %v2836_v16  ;;  %v1797_v16 = vld [vmem:[%s3237_s6 + $0x1e8] sm:$0xff] }
 0x65d   : > { %2514 = vmatpush3.bf16.msra.mxu0 %v2511_v53  ;;  %v2527_v60 = vpack.c.bf16 %v1797_v16, %v1796_v55  ;;  %v1559_v55 = vld [vmem:[%s3239_s8 + $0x50] sm:$0xff]  ;;  %v1560_v16 = vld [vmem:[%s3239_s8 + $0x58] sm:$0xff] }
 0x65e   : > { %2516 = vmatprep.subr.bf16.mxu0 %v2515_v6 }
 0x661   : > { %2518 = vmatpush3.bf16.msra.mxu0 %v2515_v6  ;;  %v2551_v6 = vpack.c.bf16 %v1554_v57, %v1553_v54 }
 0x662   : > { %2520 = vmatprep.subr.bf16.mxu0 %v2519_v11 }
 0x665   : > { %2522 = vmatpush3.bf16.msra.mxu0 %v2519_v11  ;;  %v2554_v11 = vpack.c.bf16 %v1556_v58, %v1555_v7 }
 0x666   : > { %2524 = vmatprep.subr.bf16.mxu0 %v2523_v62 }
 0x669   : > { %2526 = vmatpush3.bf16.msra.mxu0 %v2523_v62  ;;  %v2557_v62 = vpack.c.bf16 %v1558_v61, %v1557_v12 }
 0x66a   : > { %2528 = vmatprep.subr.bf16.mxu0 %v2527_v60 }
 0x66d   : > { %2530 = vmatpush3.bf16.msra.mxu0 %v2527_v60  ;;  %v2560_v60 = vpack.c.bf16 %v1560_v16, %v1559_v55 }
 0x66e   : > { %2532 = vmatprep.subr.bf16.mxu0 %v2531_v1 }
 0x671   : > { %2534 = vmatpush3.bf16.msra.mxu0 %v2531_v1  ;;  %v2563_v1 = vpack.c.bf16 %v1562_v0, %v1561_v63 }
 0x727   : > { %v2229_v2 = vpop.f32.mrb[18].mxu0 }
 0x728   : > { %v1308_v3 = vpop.f32.mrb[19].mxu0  ;;  %v1338_v8 = vadd.f32 %v2229_v2, %v3060_v20  ;;  %v1801_v20 = vld [vmem:[%s3238_s7 + $0x3] ss:$0 sm:$0xff]  ;;  %v1563_v2 = vld [vmem:[%s3239_s8 + $0x70] sm:$0xff] }
 0x729   : > { %v1337_v4 = vadd.f32 %v1308_v3, %v3063_v23  ;;  %v1564_v3 = vld [vmem:[%s3239_s8 + $0x78] sm:$0xff] }
 0x72b   : > { %v2232_v9 = vpop.f32.mrb[20].mxu0  ;;  %2268 = vmatprep.mubr.f32.mxu0 %v1337_v4  ;;  %v2566_v4 = vpack.c.bf16 %v1564_v3, %v1563_v2 }
 0x72c   : > { %v1318_v30 = vpop.f32.mrb[21].mxu0  ;;  %2269 = vmatmul.mubr.f32.vlgmr.msra.gmra.mrb[24].mxu0 %v1338_v8  ;;  %v1340_v10 = vadd.f32 %v2232_v9, %v3068_v29 }
 0x72d   : > { %v1339_v5 = vadd.f32 %v1318_v30, %v3071_v33  ;;  %v1803_v30 = vld [vmem:[%s3240_s9] ss:$0 sm:$0xff] }
 0x72f   : > { %v2235_v13 = vpop.f32.mrb[22].mxu0  ;;  %2271 = vmatprep.mubr.f32.mxu0 %v1339_v5 }
 0x730   : > { %v1328_v14 = vpop.f32.mrb[23].mxu0  ;;  %2272 = vmatmul.mubr.f32.gmra.mrb[26].mxu0 %v1340_v10  ;;  %v1342_v17 = vadd.f32 %v2235_v13, %v3076_v40 }
 0x731   : > { %v1341_v15 = vadd.f32 %v1328_v14, %v3085_v46 }
 0x733   : > { %2274 = vmatprep.mubr.f32.mxu0 %v1341_v15  ;;  %v1642_v15 = vlaneseq }
 0x734   : > { %2275 = vmatmul.mubr.f32.gmra.mrb[28].mxu0 %v1342_v17 }
 0x735   : > { %v1643_v17 = vand.u32 127, %v1642_v15 }
 0x737   : > { %vm1644_vm2 = vcmp.eq.s32.totalorder %v1643_v17, 1 }
 0x7ff   : > { %v2270_v21 = vpop.f32.mrb[24].mxu0 }
 0x800   : > { %v1440_v22 = vadd.f32 %v2270_v21, %v1801_v20  ;;  %v1434_v23 = vpop.f32.mrb[25].mxu0 }
 0x801   : > { %v1435_v24 = vadd.f32 %v1801_v20, %v1434_v23 }
 0x802   : > { %v1464_v25 = vmax.f32 %v1440_v22, 0.0 }
 0x803   : > { %v1463_v26 = vmax.f32 %v1435_v24, 0.0  ;;  %v2273_v27 = vpop.f32.mrb[26].mxu0 }
 0x804   : > { %v1470_v28 = vmul.f32 %v1464_v25, %v2740_v35  ;;  %v1450_v29 = vadd.f32 %v2273_v27, %v1801_v20  ;;  %v1444_v31 = vpop.f32.mrb[27].mxu0 }
 0x805   : > { %v1469_v32 = vmul.f32 %v1463_v26, %v2745_v38  ;;  %v1445_v33 = vadd.f32 %v1801_v20, %v1444_v31 }
 0x806   : > { %v1466_v34 = vmax.f32 %v1450_v29, 0.0 }
 0x807   : > { %v2536_v36 = vpack.c.bf16 %v1470_v28, %v1469_v32  ;;  %v1465_v37 = vmax.f32 %v1445_v33, 0.0  ;;  %v2276_v39 = vpop.f32.mrb[28].mxu0 }
 0x808   : > { %v1472_v40 = vmul.f32 %v1466_v34, %v2756_v45  ;;  %v1460_v42 = vadd.f32 %v2276_v39, %v1801_v20  ;;  %v1454_v43 = vpop.f32.mrb[29].mxu0  ;;  %v1549_v45 = vld [vmem:[%s3239_s8] sm:$0xff] }
 0x809   : > { %v1471_v46 = vmul.f32 %v1465_v37, %v2761_v48  ;;  %v1455_v47 = vadd.f32 %v1801_v20, %v1454_v43  ;;  %2537 = vmatpush3.bf16.msra.mxu1 %v2536_v36  ;;  %v1550_v48 = vld [vmem:[%s3239_s8 + $0x8] sm:$0xff] }
 0x80a   : > { %v1468_v41 = vmax.f32 %v1460_v42, 0.0  ;;  %2538 = vmatprep.subr.bf16.mxu1 %v2590_v18 }
 0x80b   : > { %v2539_v35 = vpack.c.bf16 %v1472_v40, %v1471_v46  ;;  %v1467_v44 = vmax.f32 %v1455_v47, 0.0 }
 0x80c   : > { %v1474_v38 = vmul.f32 %v1468_v41, %v2774_v56  ;;  %v2545_v56 = vpack.c.bf16 %v1550_v48, %v1549_v45 }
 0x80d   : > { %v1473_v49 = vmul.f32 %v1467_v44, %v2779_v59  ;;  %2540 = vmatpush3.bf16.msra.mxu1 %v2539_v35  ;;  %v1551_v59 = vld [vmem:[%s3239_s8 + $0x10] sm:$0xff] }
 0x80e   : > { %2541 = vmatprep.subr.bf16.mxu1 %v2590_v18  ;;  %v2548_v53 = vpack.c.bf16 %v1552_v52, %v1551_v59 }
 0x80f   : > { %v2542_v50 = vpack.c.bf16 %v1474_v38, %v1473_v49 }
 0x811   : > { %2543 = vmatpush3.bf16.msra.mxu1 %v2542_v50 }
 0x812   : > { %2544 = vmatprep.subr.bf16.mxu1 %v2590_v18 }
 0x814   : > { %2290 = vmatmul.mubr.msk.f32.vlgmr.msra.gmra.mrb[24].mxu1 %vm526_vm0, %v1475_v51 }
 0x815   : > { %2546 = vmatpush3.bf16.msra.mxu1 %v2545_v56  ;;  %2324 = vmatprep.mubr.msk.f32.mxu1 %vm2591_vm1, %v2592_v19 }
 0x816   : > { %2547 = vmatprep.subr.bf16.mxu1 %v2590_v18 }
 0x819   : > { %2549 = vmatpush3.bf16.msra.mxu1 %v2548_v53 }
 0x81a   : > { %2550 = vmatprep.subr.bf16.mxu1 %v2590_v18 }
 0x81d   : > { %2552 = vmatpush3.bf16.msra.mxu1 %v2551_v6 }
 0x81e   : > { %2553 = vmatprep.subr.bf16.mxu1 %v2590_v18 }
 0x821   : > { %2555 = vmatpush3.bf16.msra.mxu1 %v2554_v11 }
 0x822   : > { %2556 = vmatprep.subr.bf16.mxu1 %v2590_v18 }
 0x825   : > { %2558 = vmatpush3.bf16.msra.mxu1 %v2557_v62 }
 0x826   : > { %2559 = vmatprep.subr.bf16.mxu1 %v2590_v18 }
 0x829   : > { %2561 = vmatpush3.bf16.msra.mxu1 %v2560_v60 }
 0x82a   : > { %2562 = vmatprep.subr.bf16.mxu1 %v2590_v18 }
 0x82d   : > { %2564 = vmatpush3.bf16.msra.mxu1 %v2563_v1 }
 0x82e   : > { %2565 = vmatprep.subr.bf16.mxu1 %v2590_v18 }
 0x831   : > { %2567 = vmatpush3.bf16.msra.mxu1 %v2566_v4 }
 0x8e7   : > { %v1545_v8 = vpop.f32.mrb[24].mxu1 }
 0x8e8   : > { %v2291_v9 = vpop.f32.mrb[25].mxu1  ;;  %2325 = vmatmul.mubr.f32.vlgmr.msra.gmra.mrb[26].mxu1 %v1545_v8 }
 0x9bb   : > { %v1638_v5 = vpop.f32.mrb[26].mxu1 }
 0x9bc   : > { %v1639_v10 = vadd.f32 %v1803_v30, %v1638_v5  ;;  %v2326_v13 = vpop.f32.mrb[27].mxu1 }
 0x9be   : > { %v1645_v14 = vmul.f32 1.442695, %v1639_v10 }
 0x9c0   : > { %2580 = vpow2.f32 %v1645_v14 }
 0x9ca   : > { %v2581_v18 = vpop.eup %2580 }
 0x9cb   : > { %v1647_v19 = vsel %vm1644_vm2, %v2581_v18, %v1639_v10 }
 0x9cc   : > { %1648 = vst [vmem:[%s377_s29] sm:$0x3] %v1647_v19 }
 0x9cd PF: > { %s20_s13 = sadd.s32 1, %s2588_s13  }
 0x9ce   : > { %p17_p4 = scmp.ge.s32.totalorder %s20_s13, 4  }
 0x9d0   :  { %19 = sbr.rel (!%p17_p4) target bundleno = 1 (0x1), region = 99 }

</bundles_post_ra>
